<compile_context>
chip_gen: v5e
topology: v5e:2x2
jax: 0.10.0
libtpu: 0.0.40
codegen_flags: <defaults>
</compile_context>

<pallas_src>
import functools

import jax
import jax.numpy as jnp
from jax.experimental import pallas as pl
from jax.experimental.pallas import tpu as pltpu

BN_EPS = 1e-5
LANE = 128
ROW_GRAN = 16          # row-tile granularity: bf16 sublane packing (16 rows / vreg)
NEG_BIG = -1e30        # plain Python float (a jnp scalar here would be a captured const)


def _round_up(x, m):
    return (x + m - 1) // m * m


def _cdiv(a, b):
    return -(-a // b)


# ----------------------------------------------------------------------------
# Fused kernel
# ----------------------------------------------------------------------------
def _make_fused_mlp_kernel(num_layers, n_valid_out):
    """Fused (Linear[+folded BN] -> ReLU)^(L-1) -> Linear -> log_softmax, one row tile.

    Ref layout: (x_ref, W1, b1, ..., WL, bL, o_ref).
    Weights are bf16 [Cin(_pad), Cout_pad], biases f32 [1, Cout_pad], all VMEM-resident.
    """
    def kernel(*refs):
        x_ref = refs[0]
        wb = refs[1:1 + 2 * num_layers]
        o_ref = refs[1 + 2 * num_layers]

        # bf16 operands for the MXU, f32 accumulation.
        h = x_ref[...].astype(jnp.bfloat16)

        # Hidden layers: matmul + (BN-folded) bias -> ReLU.  Dropout is identity (eval).
        for li in range(num_layers - 1):
            w = wb[2 * li][...]
            b = wb[2 * li + 1][...]
            acc = jnp.dot(h, w, preferred_element_type=jnp.float32) + b
            h = jnp.maximum(acc, 0.0).astype(jnp.bfloat16)

        # Final layer + log_softmax over the (padded) class dimension (f32).
        w = wb[2 * (num_layers - 1)][...]
        b = wb[2 * (num_layers - 1) + 1][...]
        z = jnp.dot(h, w, preferred_element_type=jnp.float32) + b
        if n_valid_out < z.shape[-1]:
            col = jax.lax.broadcasted_iota(jnp.int32, z.shape, 1)
            z = jnp.where(col < n_valid_out, z, NEG_BIG)
        m = jnp.max(z, axis=-1, keepdims=True)
        shifted = z - m
        lse = jnp.log(jnp.sum(jnp.exp(shifted), axis=-1, keepdims=True))
        o_ref[...] = (shifted - lse).astype(o_ref.dtype)

    return kernel


# ----------------------------------------------------------------------------
# Parameter prep: fold BN into Linear (f32), pad hidden/output dims, cast to bf16
# ----------------------------------------------------------------------------
def prepare_params(params):
    """Returns (packed, (in_dim, out_dim)); packed = [W1,b1,...,WL,bL].
    Weights are bf16 [Cin(_pad), Cout_pad] (BN folded into hidden layers), biases f32.
    Only the FIRST layer keeps its true (unpadded) Cin so x needs no feature padding."""
    lins, bns = params["lins"], params["bns"]
    L = len(lins)
    in_dim = lins[0][0].shape[0]
    out_dim = lins[-1][0].shape[1]

    packed = []
    for li, (w_t, b) in enumerate(lins):
        cin, cout = w_t.shape
        w_t = w_t.astype(jnp.float32)
        b = b.astype(jnp.float32)
        if li < L - 1:
            gamma, beta, mean, var = bns[li]
            scale = gamma * jax.lax.rsqrt(var + BN_EPS)   # (1, cout), f32 fold
            w_t = w_t * scale                              # fold BN into weight
            b = (b - mean) * scale + beta                  # fold BN into bias
        cin_p = cin if li == 0 else _round_up(cin, LANE)   # first layer: true Cin
        cout_p = _round_up(cout, LANE)
        w_p = jnp.zeros((cin_p, cout_p), jnp.float32).at[:cin, :cout].set(w_t)
        b_p = jnp.zeros((1, cout_p), jnp.float32).at[:, :cout].set(b)
        packed += [w_p.astype(jnp.bfloat16), b_p]          # bf16 weights, f32 biases
    return packed, (in_dim, out_dim)


# ----------------------------------------------------------------------------
# BlockSpec helpers
# ----------------------------------------------------------------------------
def _const_block_spec(shape, ndim):
    """Grid-invariant (weight/bias) spec; single-buffered when supported."""
    index_map = lambda i, r=ndim: (0,) * r      # bind rank via default arg
    try:
        return pl.BlockSpec(shape, index_map, pipeline_mode=pl.Buffered(1))
    except (TypeError, AttributeError):
        return pl.BlockSpec(shape, index_map)


# ----------------------------------------------------------------------------
# Forward (single pallas_call)
# ----------------------------------------------------------------------------
@functools.partial(jax.jit, static_argnames=("in_dim", "out_dim", "tile_n"))
def mlp_forward_packed(packed, x, *, in_dim, out_dim, tile_n=256):
    N = x.shape[0]
    num_layers = len(packed) // 2
    cin = packed[0].shape[0]       # true in_channels (unpadded)
    cout_p = packed[-1].shape[1]   # padded class dim

    # Row tiling: balanced tiles (avoid a mostly-dead remainder tile) and >=2 grid
    # steps when the batch allows it so the 'parallel' axis shards across 2 TCs (v7x).
    num_tiles = max(1, _cdiv(N, tile_n))
    if N >= 2 * ROW_GRAN:
        num_tiles = max(num_tiles, 2)
    tn = _round_up(_cdiv(N, num_tiles), ROW_GRAN)
    n_pad = _round_up(N, tn)
    grid = (n_pad // tn,)

    x = x.astype(jnp.float32)
    if n_pad != N:                         # only pad rows when actually needed
        x = jnp.pad(x, ((0, n_pad - N), (0, 0)))

    in_specs = [pl.BlockSpec((tn, cin), lambda i: (i, 0))]
    for arr in packed:
        in_specs.append(_const_block_spec(arr.shape, arr.ndim))

    # VMEM budget: single-buffered weights/biases + double-buffered x / out tiles.
    weight_bytes = sum(int(a.size) * a.dtype.itemsize for a in packed)
    tile_bytes = 2 * (tn * cin * 4) + 2 * (tn * cout_p * 4)
    vmem_limit = int(1.5 * (weight_bytes + tile_bytes)) + (8 << 20)
    vmem_limit = max(16 << 20, min(vmem_limit, 100 << 20))

    kernel = _make_fused_mlp_kernel(num_layers, out_dim)
    out_p = pl.pallas_call(
        kernel,
        out_shape=jax.ShapeDtypeStruct((n_pad, cout_p), jnp.float32),
        grid=grid,
        in_specs=in_specs,
        out_specs=pl.BlockSpec((tn, cout_p), lambda i: (i, 0)),
        compiler_params=pltpu.CompilerParams(
            dimension_semantics=("parallel",),
            vmem_limit_bytes=vmem_limit),
    )(x, *packed)

    return out_p[:N, :out_dim]


# ----------------------------------------------------------------------------
# Parameter construction + pure-JAX reference
# ----------------------------------------------------------------------------
def init_mlp_params(key, in_channels, hidden_channels, out_channels, num_layers):
    dims = [in_channels] + [hidden_channels] * (num_layers - 1) + [out_channels]
    params = {"lins": [], "bns": []}
    for li in range(num_layers):
        cin, cout = dims[li], dims[li + 1]
        key, kw, kb = jax.random.split(key, 3)
        scale = 1.0 / jnp.sqrt(cin)
        # stored transposed: [Cin, Cout]
        w_t = jax.random.uniform(kw, (cin, cout), jnp.float32, -scale, scale)
        b = jax.random.uniform(kb, (1, cout), jnp.float32, -scale, scale)
        params["lins"].append((w_t, b))
        if li < num_layers - 1:
            key, kg, kbe, km, kv = jax.random.split(key, 5)
            gamma = 1.0 + 0.1 * jax.random.normal(kg, (1, cout), jnp.float32)
            beta = 0.1 * jax.random.normal(kbe, (1, cout), jnp.float32)
            mean = 0.1 * jax.random.normal(km, (1, cout), jnp.float32)
            var = 1.0 + 0.1 * jax.random.uniform(kv, (1, cout), jnp.float32)
            params["bns"].append((gamma, beta, mean, var))
    return params


def mlp_forward_ref(params, x):
    """Pure-JAX reference (un-fused, un-folded, f32) for correctness check."""
    for (w_t, b), (gamma, beta, mean, var) in zip(params["lins"][:-1],
                                                  params["bns"]):
        y = x @ w_t + b
        y = (y - mean) * jax.lax.rsqrt(var + BN_EPS) * gamma + beta
        x = jnp.maximum(y, 0.0)
    w_t, b = params["lins"][-1]
    z = x @ w_t + b
    return jax.nn.log_softmax(z, axis=-1)


if __name__ == "__main__":
    # Module hyper-params (small, consistent with MLP(in, hidden, out, num_layers, dropout))
    in_channels, hidden_channels, out_channels = 32, 64, 16
    num_layers, dropout = 3, 0.5   # dropout unused in eval mode
    N = 16                         # batch of node features

    key = jax.random.PRNGKey(0)
    kp, kx = jax.random.split(key)
    params = init_mlp_params(kp, in_channels, hidden_channels, out_channels,
                             num_layers)
    x = jax.random.normal(kx, (N, in_channels), jnp.float32)

    packed, (in_dim, out_dim) = prepare_params(params)
    out = mlp_forward_packed(packed, x, in_dim=in_dim, out_dim=out_dim)
    out = jax.block_until_ready(out)

    ref = mlp_forward_ref(params, x)
    assert out.shape == (N, out_channels)
    # bf16 matmul operands (f32 accumulation) -> relaxed tolerance vs f32 reference.
    assert jnp.allclose(out, ref, atol=5e-2, rtol=5e-2), "mismatch vs reference"
    # log_softmax rows must sum (in prob space) to 1
    assert jnp.allclose(jnp.sum(jnp.exp(out), axis=-1), 1.0, atol=1e-5)

    print("KERNEL_OK")
</pallas_src>

<mosaic_0001>
module attributes {stable_mosaic.version = 11 : i64} {
  func.func @kernel(%arg0: i32, %arg1: memref<16x32xf32, #tpu.memory_space<vmem>>, %arg2: memref<32x128xbf16, #tpu.memory_space<vmem>>, %arg3: memref<1x128xf32, #tpu.memory_space<vmem>>, %arg4: memref<128x128xbf16, #tpu.memory_space<vmem>>, %arg5: memref<1x128xf32, #tpu.memory_space<vmem>>, %arg6: memref<128x128xbf16, #tpu.memory_space<vmem>>, %arg7: memref<1x128xf32, #tpu.memory_space<vmem>>, %arg8: memref<16x128xf32, #tpu.memory_space<vmem>>) attributes {dimension_semantics = [#tpu.dimension_semantics<parallel>], iteration_bounds = array<i64: 1>, scalar_prefetch = 0 : i64, scratch_operands = 0 : i64, tpu.core_type = #tpu.core_type<tc>, window_params = [{transform_indices = @transform_0, window_bounds = array<i64: 16, 32>}, {pipeline_mode = #tpu.pipeline_mode<synchronous>, transform_indices = @transform_1, window_bounds = array<i64: 32, 128>}, {pipeline_mode = #tpu.pipeline_mode<synchronous>, transform_indices = @transform_2, window_bounds = array<i64: 1, 128>}, {pipeline_mode = #tpu.pipeline_mode<synchronous>, transform_indices = @transform_3, window_bounds = array<i64: 128, 128>}, {pipeline_mode = #tpu.pipeline_mode<synchronous>, transform_indices = @transform_4, window_bounds = array<i64: 1, 128>}, {pipeline_mode = #tpu.pipeline_mode<synchronous>, transform_indices = @transform_5, window_bounds = array<i64: 128, 128>}, {pipeline_mode = #tpu.pipeline_mode<synchronous>, transform_indices = @transform_6, window_bounds = array<i64: 1, 128>}, {transform_indices = @transform_7, window_bounds = array<i64: 16, 128>}]} {
    %c0 = arith.constant 0 : index
    %c0_0 = arith.constant 0 : index
    %0 = vector.load %arg1[%c0, %c0_0] : memref<16x32xf32, #tpu.memory_space<vmem>>, vector<16x32xf32>
    %1 = arith.truncf %0 : vector<16x32xf32> to vector<16x32xbf16>
    %c0_1 = arith.constant 0 : index
    %c0_2 = arith.constant 0 : index
    %2 = vector.load %arg2[%c0_1, %c0_2] : memref<32x128xbf16, #tpu.memory_space<vmem>>, vector<32x128xbf16>
    %c0_3 = arith.constant 0 : index
    %c0_4 = arith.constant 0 : index
    %3 = vector.load %arg3[%c0_3, %c0_4] : memref<1x128xf32, #tpu.memory_space<vmem>>, vector<1x128xf32>
    %cst = arith.constant dense<0.000000e+00> : vector<16x128xf32>
    %4 = tpu.matmul %1, %2, %cst {dimension_numbers = #tpu.dot_dimension_numbers<[1], [0], [0], [1], [0, 0, 1, 1], [], []>} : vector<16x32xbf16>, vector<32x128xbf16>, vector<16x128xf32> -> vector<16x128xf32>
    %5 = vector.broadcast %3 : vector<1x128xf32> to vector<16x128xf32>
    %6 = arith.addf %4, %5 : vector<16x128xf32>
    %cst_5 = arith.constant 0.000000e+00 : f32
    %7 = vector.broadcast %cst_5 : f32 to vector<16x128xf32>
    %8 = arith.maximumf %6, %7 : vector<16x128xf32>
    %9 = arith.truncf %8 : vector<16x128xf32> to vector<16x128xbf16>
    %c0_6 = arith.constant 0 : index
    %c0_7 = arith.constant 0 : index
    %10 = vector.load %arg4[%c0_6, %c0_7] : memref<128x128xbf16, #tpu.memory_space<vmem>>, vector<128x128xbf16>
    %c0_8 = arith.constant 0 : index
    %c0_9 = arith.constant 0 : index
    %11 = vector.load %arg5[%c0_8, %c0_9] : memref<1x128xf32, #tpu.memory_space<vmem>>, vector<1x128xf32>
    %cst_10 = arith.constant dense<0.000000e+00> : vector<16x128xf32>
    %12 = tpu.matmul %9, %10, %cst_10 {dimension_numbers = #tpu.dot_dimension_numbers<[1], [0], [0], [1], [0, 0, 1, 1], [], []>} : vector<16x128xbf16>, vector<128x128xbf16>, vector<16x128xf32> -> vector<16x128xf32>
    %13 = vector.broadcast %11 : vector<1x128xf32> to vector<16x128xf32>
    %14 = arith.addf %12, %13 : vector<16x128xf32>
    %cst_11 = arith.constant 0.000000e+00 : f32
    %15 = vector.broadcast %cst_11 : f32 to vector<16x128xf32>
    %16 = arith.maximumf %14, %15 : vector<16x128xf32>
    %17 = arith.truncf %16 : vector<16x128xf32> to vector<16x128xbf16>
    %c0_12 = arith.constant 0 : index
    %c0_13 = arith.constant 0 : index
    %18 = vector.load %arg6[%c0_12, %c0_13] : memref<128x128xbf16, #tpu.memory_space<vmem>>, vector<128x128xbf16>
    %c0_14 = arith.constant 0 : index
    %c0_15 = arith.constant 0 : index
    %19 = vector.load %arg7[%c0_14, %c0_15] : memref<1x128xf32, #tpu.memory_space<vmem>>, vector<1x128xf32>
    %cst_16 = arith.constant dense<0.000000e+00> : vector<16x128xf32>
    %20 = tpu.matmul %17, %18, %cst_16 {dimension_numbers = #tpu.dot_dimension_numbers<[1], [0], [0], [1], [0, 0, 1, 1], [], []>} : vector<16x128xbf16>, vector<128x128xbf16>, vector<16x128xf32> -> vector<16x128xf32>
    %21 = vector.broadcast %19 : vector<1x128xf32> to vector<16x128xf32>
    %22 = arith.addf %20, %21 : vector<16x128xf32>
    %23 = tpu.iota {dimensions = array<i32: 1>} : vector<16x128xi32>
    %c16_i32 = arith.constant 16 : i32
    %24 = vector.broadcast %c16_i32 : i32 to vector<16x128xi32>
    %25 = arith.cmpi slt, %23, %24 : vector<16x128xi32>
    %cst_17 = arith.constant -1.000000e+30 : f32
    %26 = vector.broadcast %cst_17 : f32 to vector<16x128xf32>
    %27 = arith.select %25, %22, %26 : vector<16x128xi1>, vector<16x128xf32>
    %cst_18 = arith.constant dense<0xFF800000> : vector<16xf32>
    %28 = vector.multi_reduction <maximumf>, %27, %cst_18 [1] : vector<16x128xf32> to vector<16xf32>
    %29 = vector.shape_cast %28 : vector<16xf32> to vector<16x1xf32>
    %30 = vector.broadcast %29 : vector<16x1xf32> to vector<16x128xf32>
    %31 = arith.subf %27, %30 : vector<16x128xf32>
    %32 = math.exp %31 : vector<16x128xf32>
    %cst_19 = arith.constant dense<0.000000e+00> : vector<16xf32>
    %33 = vector.multi_reduction <add>, %32, %cst_19 [1] : vector<16x128xf32> to vector<16xf32>
    %34 = vector.shape_cast %33 : vector<16xf32> to vector<16x1xf32>
    %35 = math.log %34 : vector<16x1xf32>
    %36 = vector.broadcast %35 : vector<16x1xf32> to vector<16x128xf32>
    %37 = arith.subf %31, %36 : vector<16x128xf32>
    %c0_20 = arith.constant 0 : index
    %c0_21 = arith.constant 0 : index
    %38 = vector.load %arg8[%c0_20, %c0_21] : memref<16x128xf32, #tpu.memory_space<vmem>>, vector<16x128xf32>
    tpu.vector_store %arg8[%c0_20, %c0_21], %37 {strides = array<i32>} : memref<16x128xf32, #tpu.memory_space<vmem>>, vector<16x128xf32>,
    return
  }
  func.func @transform_0(%arg0: i32) -> (i32, i32) {
    %c0_i32 = arith.constant 0 : i32
    %c0_i32_0 = arith.constant 0 : i32
    return %arg0, %c0_i32 : i32, i32
  }
  func.func @transform_1(%arg0: i32) -> (i32, i32) {
    %c0_i32 = arith.constant 0 : i32
    %c0_i32_0 = arith.constant 0 : i32
    %c0_i32_1 = arith.constant 0 : i32
    return %c0_i32, %c0_i32_0 : i32, i32
  }
  func.func @transform_2(%arg0: i32) -> (i32, i32) {
    %c0_i32 = arith.constant 0 : i32
    %c0_i32_0 = arith.constant 0 : i32
    %c0_i32_1 = arith.constant 0 : i32
    return %c0_i32, %c0_i32_0 : i32, i32
  }
  func.func @transform_3(%arg0: i32) -> (i32, i32) {
    %c0_i32 = arith.constant 0 : i32
    %c0_i32_0 = arith.constant 0 : i32
    %c0_i32_1 = arith.constant 0 : i32
    return %c0_i32, %c0_i32_0 : i32, i32
  }
  func.func @transform_4(%arg0: i32) -> (i32, i32) {
    %c0_i32 = arith.constant 0 : i32
    %c0_i32_0 = arith.constant 0 : i32
    %c0_i32_1 = arith.constant 0 : i32
    return %c0_i32, %c0_i32_0 : i32, i32
  }
  func.func @transform_5(%arg0: i32) -> (i32, i32) {
    %c0_i32 = arith.constant 0 : i32
    %c0_i32_0 = arith.constant 0 : i32
    %c0_i32_1 = arith.constant 0 : i32
    return %c0_i32, %c0_i32_0 : i32, i32
  }
  func.func @transform_6(%arg0: i32) -> (i32, i32) {
    %c0_i32 = arith.constant 0 : i32
    %c0_i32_0 = arith.constant 0 : i32
    %c0_i32_1 = arith.constant 0 : i32
    return %c0_i32, %c0_i32_0 : i32, i32
  }
  func.func @transform_7(%arg0: i32) -> (i32, i32) {
    %c0_i32 = arith.constant 0 : i32
    %c0_i32_0 = arith.constant 0 : i32
    return %arg0, %c0_i32 : i32, i32
  }
}

</mosaic_0001>

<bundles_post_ra>
// kernel: mlp_forward_packed.1
= control target key start
LH: loop header
LB: loop body
LE: loop exit
PB: predicated region body
PF: predicated region fallthrough
CT: control target
= control target key end

     0   :  { %12 = vsyncpa [#allocation3], 0  ;;  %s716_s0 = inlined_call_operand.hbm [shape: f32[16,32], index: 0, kind: input, shape index: {}]   ;;  %s717_s1 = inlined_call_operand.hbm [shape: bf16[32,128], index: 1, kind: input, shape index: {}]   ;;  %s718_s2 = inlined_call_operand.hbm [shape: f32[1,128], index: 2, kind: input, shape index: {}]   ;;  %s719_s3 = inlined_call_operand.hbm [shape: bf16[128,128], index: 3, kind: input, shape index: {}]   ;;  %s720_s4 = inlined_call_operand.vmem [shape: f32[1,128], index: 4, kind: input, shape index: {}]   ;;  %s721_s5 = inlined_call_operand.hbm [shape: bf16[128,128], index: 5, kind: input, shape index: {}]   ;;  %s722_s6 = inlined_call_operand.vmem [shape: f32[1,128], index: 6, kind: input, shape index: {}]   ;;  %s723_s7 = inlined_call_operand.hbm [shape: f32[16,128], index: 7, kind: output, shape index: {}]  }
   0x1   :  { %13 = vsyncpa [#allocation6], 0 }
   0x2   :  { %14 = vsyncpa [#allocation9], 0  ;;  %s33_s26 = sshll.u32 %s717_s1, 4  ;;  %s34_s26 = int_to_ptr.hbm [resolvable:$true] %s33_s26 }
   0x3   :  { %15 = vsyncpa [#allocation4], 0  ;;  %s627_s27 = smov [#allocation5]   ;;  %s57_s8 = sshll.u32 %s719_s3, 4  ;;  %s58_s8 = int_to_ptr.hbm [resolvable:$true] %s57_s8 }
   0x4   :  { %s35_s28 = sshll.u32 %s627_s27, 4  ;;  %s628_s9 = smov 64   ;;  %s36_s28 = int_to_ptr.vmem [resolvable:$true] %s35_s28 }
   0x5   :  { %s629_s10 = smov 4   ;;  %s630_s11 = smov [#allocation8]  }
   0x6   :  { %41 = dma.hbm_to_vmem [thread:$0]  %s34_s26, 256, %s36_s28, [#allocation6], %s628_s9, %s628_s9, %s629_s10  }
   0x7   :  { %s59_s12 = sshll.u32 %s630_s11, 4  ;;  %s20_s14 = sshll.u32 %s716_s0, 4  ;;  %s60_s12 = int_to_ptr.vmem [resolvable:$true] %s59_s12  ;;  %s21_s14 = int_to_ptr.hbm [resolvable:$true] %s20_s14 }
   0x8   :  { %65 = dma.hbm_to_vmem [thread:$0]  %s58_s8, 1024, %s60_s12, [#allocation9], %s628_s9, %s628_s9, %s629_s10  }
   0x9   :  { %s631_s3 = smov [#allocation2]   ;;  %s47_s18 = sshll.u32 %s718_s2, 4  ;;  %s48_s18 = int_to_ptr.hbm [resolvable:$true] %s47_s18 }
   0xa   :  { %s22_s15 = sshll.u32 %s631_s3, 4  ;;  %s632_s19 = smov 128   ;;  %s23_s15 = int_to_ptr.vmem [resolvable:$true] %s22_s15 }
   0xb   :  { %s633_s20 = smov 8   ;;  %s634_s0 = smov [#allocation7]  }
   0xc   :  { %28 = dma.hbm_to_vmem [thread:$0]  %s21_s14, 256, %s23_s15, [#allocation3], %s632_s19, %s632_s19, %s633_s20  }
   0xd   :  { %s49_s21 = sshll.u32 %s634_s0, 4  ;;  %s72_s24 = sshll.u32 %s721_s5, 4  ;;  %s50_s21 = int_to_ptr.vmem [resolvable:$true] %s49_s21  ;;  %s73_s24 = int_to_ptr.hbm [resolvable:$true] %s72_s24 }
   0xe   :  { %52 = dma.hbm_to_vmem [thread:$0]  %s48_s18, 16, %s50_s21, [#allocation6]  }
   0xf   :  { %s635_s25 = smov [#allocation10]  }
  0x10   :  { %s74_s26 = sshll.u32 %s635_s25, 4  ;;  %s75_s26 = int_to_ptr.vmem [resolvable:$true] %s74_s26 }
  0x11   :  { %80 = dma.hbm_to_vmem [thread:$0]  %s73_s24, 1024, %s75_s26, [#allocation9], %s628_s9, %s628_s9, %s629_s10  }
  0x12   :  { %619 = dma.done.wait [#allocation3], 256  }
  0x13   :  { %620 = vsyncadd [#allocation3], 4294967040 }
  0x14   :  { %621 = dma.done.wait [#allocation6], 272  }
  0x15   :  { %622 = vsyncadd [#allocation6], 4294967024 }
  0x16   :  { %623 = dma.done.wait [#allocation9], 2048  }
  0x17   :  { %624 = vsyncadd [#allocation9], 4294965248  ;;  %v437_v0 = vld [vmem:[#allocation5 + $0x8] sm:$0xff]  ;;  %v436_v1 = vld [vmem:[#allocation5] sm:$0xff]  ;;  %vm127_vm0 = vcmask 261120   ;;  %v315_v37 = vlaneseq  ;;  %s348_s8 = sshll.u32 %s723_s7, 4  ;;  %s349_s8 = int_to_ptr.hbm [resolvable:$true] %s348_s8 }
  0x18   :  { %v445_v2 = vld [vmem:[#allocation8 + $0x38] sm:$0xff]  ;;  %137 = vmatpush.bf16.msra.mxu0 %v437_v0  ;;  %v105_v4 = vld [vmem:[#allocation2 + $0x8] sm:$0xff]  ;;  %v444_v5 = vld [vmem:[#allocation8 + $0x30] sm:$0xff] }
  0x19   :  { %v104_v3 = vld [vmem:[#allocation2] sm:$0xff]  ;;  %216 = vmatpush.bf16.msra.mxu1 %v445_v2  ;;  %v443_v7 = vld [vmem:[#allocation8 + $0x28] sm:$0xff]  ;;  %v440_v10 = vld [vmem:[#allocation8 + $0x10] sm:$0xff]  ;;  %v316_v38 = vand.u32 127, %v315_v37 }
  0x1a   :  { %v106_v6 = vpack.c.bf16 %v105_v4, %v104_v3  ;;  %v442_v8 = vld [vmem:[#allocation8 + $0x20] sm:$0xff]  ;;  %v441_v9 = vld [vmem:[#allocation8 + $0x18] sm:$0xff]  ;;  %v439_v11 = vld [vmem:[#allocation8 + $0x8] sm:$0xff] }
  0x1b   :  { %v438_v12 = vld [vmem:[#allocation8] sm:$0xff]  ;;  %v453_v13 = vld [vmem:[#allocation10 + $0x38] sm:$0xff]  ;;  %v452_v14 = vld [vmem:[#allocation10 + $0x30] sm:$0xff]  ;;  %vm317_vm1 = vcmp.lt.s32.totalorder %v316_v38, 16 }
  0x1c   :  { %138 = vmatpush.bf16.msra.mxu0 %v436_v1  ;;  %301 = vmatpush.bf16.msra.mxu2 %v453_v13  ;;  %v451_v15 = vld [vmem:[#allocation10 + $0x28] sm:$0xff]  ;;  %v450_v16 = vld [vmem:[#allocation10 + $0x20] sm:$0xff]  ;;  %v464_v18 = vld [vmem:[#allocation7] ss:$0 sm:$0xff] }
  0x1d   :  { %217 = vmatpush.bf16.msra.mxu1 %v444_v5  ;;  %v449_v25 = vld [vmem:[#allocation10 + $0x18] sm:$0xff]  ;;  %v448_v26 = vld [vmem:[#allocation10 + $0x10] sm:$0xff]  ;;  %v447_v27 = vld [vmem:[#allocation10 + $0x8] sm:$0xff] }
  0x1e   :  { %v446_v28 = vld [vmem:[#allocation10] sm:$0xff]  ;;  %v465_v30 = vld [vmem:[%s720_s4] ss:$0 sm:$0xff]  ;;  %s636_s4 = smov [#allocation11]  }
  0x1f   :  { %371 = vmatmul.msk.bf16.vlgmr.msra.gmra.mxu0 %vm127_vm0, %v106_v6  ;;  %v466_v39 = vld [vmem:[%s722_s6] ss:$0 sm:$0xff]  ;;  %s346_s6 = sshll.u32 %s636_s4, 4  ;;  %s347_s6 = int_to_ptr.vmem [resolvable:$true] %s346_s6 }
  0x20   :  { %302 = vmatpush.bf16.msra.mxu2 %v452_v14 }
  0x21   :  { %218 = vmatpush.bf16.msra.mxu1 %v443_v7 }
  0x24   :  { %303 = vmatpush.bf16.msra.mxu2 %v451_v15 }
  0x25   :  { %219 = vmatpush.bf16.msra.mxu1 %v442_v8 }
  0x28   :  { %304 = vmatpush.bf16.msra.mxu2 %v450_v16 }
  0x29   :  { %220 = vmatpush.bf16.msra.mxu1 %v441_v9 }
  0x2c   :  { %305 = vmatpush.bf16.msra.mxu2 %v449_v25 }
  0x2d   :  { %221 = vmatpush.bf16.msra.mxu1 %v440_v10 }
  0x30   :  { %306 = vmatpush.bf16.msra.mxu2 %v448_v26 }
  0x31   :  { %222 = vmatpush.bf16.msra.mxu1 %v439_v11 }
  0x34   :  { %307 = vmatpush.bf16.msra.mxu2 %v447_v27 }
  0x35   :  { %223 = vmatpush.bf16.msra.mxu1 %v438_v12 }
  0x38   :  { %308 = vmatpush.bf16.msra.mxu2 %v446_v28 }
  0x9c   :  { %v140_v17 = vpop.f32.mrf.mxu0 }
  0x9d   :  { %v141_v19 = vadd.f32 %v464_v18, %v140_v17 }
  0x9f   :  { %v145_v22 = vmax.f32 %v141_v19, 0.0 }
  0xa4   :  { %v142_v20 = vpop.f32.mrf.mxu0 }
  0xa5   :  { %v143_v21 = vadd.f32 %v464_v18, %v142_v20 }
  0xa7   :  { %v146_v23 = vmax.f32 %v143_v21, 0.0 }
  0xa9   :  { %v147_v24 = vpack.c.bf16 %v146_v23, %v145_v22 }
  0xab   :  { %224 = vmatmul.bf16.vlgmr.msra.gmra.mxu1 %v147_v24 }
 0x128   :  { %v225_v29 = vpop.f32.mrf.mxu1 }
 0x129   :  { %v226_v31 = vadd.f32 %v465_v30, %v225_v29 }
 0x12b   :  { %v230_v34 = vmax.f32 %v226_v31, 0.0 }
 0x130   :  { %v227_v32 = vpop.f32.mrf.mxu1 }
 0x131   :  { %v228_v33 = vadd.f32 %v465_v30, %v227_v32 }
 0x133   :  { %v231_v35 = vmax.f32 %v228_v33, 0.0 }
 0x135   :  { %v232_v36 = vpack.c.bf16 %v231_v35, %v230_v34 }
 0x137   :  { %309 = vmatmul.bf16.vlgmr.msra.gmra.mxu2 %v232_v36 }
 0x1ba   :  { %v310_v40 = vpop.f32.mrf.mxu2 }
 0x1bb   :  { %v311_v41 = vadd.f32 %v466_v39, %v310_v40 }
 0x1bd   :  { %v318_v42 = vsel %vm317_vm1, %v311_v41, -1e+30 }
 0x1be   :  { %320 = vmax.xlane.f32.xlu0 %v318_v42 }
 0x1c2   :  { %v312_v43 = vpop.f32.mrf.mxu2 }
 0x1c3   :  { %v313_v44 = vadd.f32 %v466_v39, %v312_v43 }
 0x1c5   :  { %v319_v45 = vsel %vm317_vm1, %v313_v44, -1e+30 }
 0x1c6   :  { %322 = vmax.xlane.f32.xlu0 %v319_v45 }
 0x231   :  { %v321_v46 = vpop.xlane.xlu0 %320 }
 0x232   :  { %v324_v47 = vsub.f32 %v318_v42, %v321_v46 }
 0x234   :  { %v326_v48 = vmul.f32 1.442695, %v324_v47 }
 0x236   :  { %467 = vpow2.f32 %v326_v48 }
 0x239   :  { %v323_v49 = vpop.xlane.xlu0 %322 }
 0x23a   :  { %v325_v50 = vsub.f32 %v319_v45, %v323_v49 }
 0x23c   :  { %v468_v51 = vpop.eup %467  ;;  %v328_v52 = vmul.f32 1.442695, %v325_v50 }
 0x23d   :  { %330 = vadd.xlane.f32.xlu1 %v468_v51 }
 0x23e   :  { %469 = vpow2.f32 %v328_v52 }
 0x244   :  { %v470_v53 = vpop.eup %469 }
 0x245   :  { %332 = vadd.xlane.f32.xlu1 %v470_v53 }
 0x2b0   :  { %v331_v54 = vpop.xlane.xlu1 %330 }
 0x2b1   :  { %471 = vlog2.f32 %v331_v54 }
 0x2b7   :  { %v472_v55 = vpop.eup %471 }
 0x2b8   :  { %v335_v56 = vmul.f32 0.6931472, %v472_v55  ;;  %v333_v57 = vpop.xlane.xlu1 %332 }
 0x2b9   :  { %473 = vlog2.f32 %v333_v57 }
 0x2ba   :  { %v338_v58 = vsub.f32 %v324_v47, %v335_v56 }
 0x2bc   :  { %340 = vst [vmem:[#allocation11] sm:$0xff] %v338_v58 }
 0x2bf   :  { %v474_v59 = vpop.eup %473 }
 0x2c0   :  { %v337_v60 = vmul.f32 0.6931472, %v474_v59 }
 0x2c2   :  { %v339_v61 = vsub.f32 %v325_v50, %v337_v60 }
 0x2c4   :  { %341 = vst [vmem:[#allocation11 + $0x8] sm:$0xff] %v339_v61 }
 0x2c5   :  { %354 = dma.vmem_to_hbm [thread:$0]  %s347_s6, 256, %s349_s8, [#allocation4], %s632_s19, %s632_s19, %s633_s20  }
 0x2c6   :  { %625 = dma.done.wait [#allocation4], 256  }
 0x2c7   :  { %626 = vsyncadd [#allocation4], 4294967040 }
 0x2c8   :  { %359 = vsyncpa [#allocation3], 1 }
 0x2c9   :  { %360 = vsyncpa [#allocation6], 1 }
 0x2ca   :  { %361 = vsyncpa [#allocation9], 1 }
 0x2cb   :  { %362 = vsyncpa [#allocation4], 1 }

</bundles_post_ra>
